<compile_context>
chip_gen: v6e
topology: v6e:2x2x1
jax: 0.10.0
libtpu: 0.0.40
codegen_flags: <defaults>
</compile_context>

<pallas_src>
import functools

import jax
import jax.numpy as jnp
from jax import lax
from jax.experimental import pallas as pl
from jax.experimental.pallas import tpu as pltpu


# ---------------------------------------------------------------------------
# Kernel
# ---------------------------------------------------------------------------
def env_model_kernel(s_ref, a_ref,
                     w1s_ref, w1a_ref, b1_ref,
                     w2_ref, b2_ref,
                     wh_ref, bh_ref,
                     out_ref, *, precision):
    cdt = w1s_ref.dtype
    # In-kernel cast: activations stream from HBM as raw f32 (no wrapper-side
    # cast/pad pass); downcast to the compute dtype happens on the VPU here.
    s = s_ref[...].astype(cdt)
    a = a_ref[...].astype(cdt)

    # fc1 over torch.cat([state, action]) in split-weight form (no concat):
    # MXU dots accumulate in f32; bias add + ReLU stay in f32 on the VPU.
    h = (jnp.dot(s, w1s_ref[...], preferred_element_type=jnp.float32,
                 precision=precision)
         + jnp.dot(a, w1a_ref[...], preferred_element_type=jnp.float32,
                   precision=precision)
         + b1_ref[...])
    h = jnp.maximum(h, 0.0).astype(cdt)

    # fc2
    h2 = jnp.dot(h, w2_ref[...], preferred_element_type=jnp.float32,
                 precision=precision) + b2_ref[...]
    h2 = jnp.maximum(h2, 0.0).astype(cdt)

    # fused heads: [next_state | reward] as one lane-contiguous output slab
    out_ref[...] = (jnp.dot(h2, wh_ref[...], preferred_element_type=jnp.float32,
                            precision=precision)
                    + bh_ref[...]).astype(out_ref.dtype)


# ---------------------------------------------------------------------------
# Tiling helpers
# ---------------------------------------------------------------------------
def _round_up(x, m):
    return ((x + m - 1) // m) * m


def _vmem_capacity_bytes():
    try:
        cap = int(pltpu.get_tpu_info().vmem_capacity_bytes)
        if cap > 0:
            return cap
    except Exception:
        pass
    return 64 * 1024 * 1024  # conservative: v7x per-TensorCore physical VMEM


def _pick_tb(batch, per_row_bytes, fixed_bytes, budget_bytes, mult):
    """Largest batch tile (multiple of `mult`) fitting the VMEM budget,
    capped at 32768 rows and at >=2 grid steps when the batch allows it."""
    avail = max(budget_bytes - fixed_bytes, per_row_bytes * mult)
    tb = (avail // per_row_bytes // mult) * mult
    tb = max(mult, min(tb, 32768))
    if batch > 2 * mult:
        # Keep at least two grid steps so ("parallel",) can shard tiles across
        # v7x's two TensorCores (no-op on v5e/v6e).
        tb = min(tb, _round_up((batch + 1) // 2, mult))
    tb = min(tb, _round_up(batch, mult))
    return int(tb)


# ---------------------------------------------------------------------------
# Parameter prep (one-time): transpose to (in, out), split fc1, fuse heads, cast
# ---------------------------------------------------------------------------
def prepare_params(params, state_size, compute_dtype=jnp.bfloat16):
    """params holds PyTorch nn.Linear layout weights: (out, in) + (out,) biases.
    Biases stay f32 (added on the f32 accumulator inside the kernel)."""
    w1 = params["fc1_w"].T.astype(compute_dtype)                 # (state+action, hidden)
    w1s = w1[:state_size, :]                                     # (state, hidden)
    w1a = w1[state_size:, :]                                     # (action, hidden)
    b1 = params["fc1_b"].astype(jnp.float32).reshape(1, -1)      # (1, hidden)
    w2 = params["fc2_w"].T.astype(compute_dtype)                 # (hidden, hidden)
    b2 = params["fc2_b"].astype(jnp.float32).reshape(1, -1)      # (1, hidden)
    wh = jnp.concatenate([params["next_state_w"], params["reward_w"]],
                         axis=0).T.astype(compute_dtype)         # (hidden, state+1)
    bh = jnp.concatenate([params["next_state_b"], params["reward_b"]],
                         axis=0).astype(jnp.float32).reshape(1, -1)
    return (w1s, w1a, b1, w2, b2, wh, bh)


# ---------------------------------------------------------------------------
# Forward
# ---------------------------------------------------------------------------
@functools.partial(jax.jit, static_argnums=(3,))
def _forward(state, action, prepared, weight_bufs):
    w1s, w1a, b1, w2, b2, wh, bh = prepared
    B, state_size = state.shape
    _, action_size = action.shape
    hidden = w2.shape[0]
    out_width = wh.shape[1]                      # state_size + 1
    cdt = jnp.dtype(w1s.dtype)
    mult = 16 if cdt.itemsize < 4 else 8

    # f32 path: force full-precision MXU passes so tight tolerances are real.
    precision = lax.Precision.HIGHEST if cdt.itemsize == 4 else None

    # --- VMEM-budgeted batch tile ------------------------------------------
    cap = _vmem_capacity_bytes()
    weight_bytes = weight_bufs * sum(int(w.size) * jnp.dtype(w.dtype).itemsize
                                     for w in prepared)
    per_row = (2 * 4 * (state_size + action_size)   # f32 in-streams, double-buffered
               + 2 * 4 * out_width                  # f32 out-stream, double-buffered
               + 3 * 4 * hidden                     # f32 h/h2 + cast temporaries
               + cdt.itemsize * (state_size + action_size))
    TB = _pick_tb(B, per_row, weight_bytes, int(cap * 0.75), mult)
    nb = pl.cdiv(B, TB)

    flops = 2 * B * (hidden * (state_size + action_size)
                     + hidden * hidden
                     + hidden * out_width)
    bytes_accessed = (state.size * 4 + action.size * 4
                      + weight_bytes // weight_bufs
                      + B * out_width * 4)

    batch_spec = lambda width: pl.BlockSpec((TB, width), lambda i: (i, 0))
    if weight_bufs == 1:
        # Weights never change across grid steps -> single VMEM buffer.
        const_spec = lambda shape: pl.BlockSpec(shape, lambda i: (0, 0),
                                                pipeline_mode=pl.Buffered(1))
    else:
        const_spec = lambda shape: pl.BlockSpec(shape, lambda i: (0, 0))

    out = pl.pallas_call(
        functools.partial(env_model_kernel, precision=precision),
        out_shape=jax.ShapeDtypeStruct((B, out_width), jnp.float32),
        grid=(nb,),
        in_specs=[
            batch_spec(state_size),          # state tile (raw f32, cast in-kernel)
            batch_spec(action_size),         # action tile
            const_spec(w1s.shape),           # weights stay VMEM-resident
            const_spec(w1a.shape),
            const_spec(b1.shape),
            const_spec(w2.shape),
            const_spec(b2.shape),
            const_spec(wh.shape),
            const_spec(bh.shape),
        ],
        out_specs=batch_spec(out_width),
        compiler_params=pltpu.CompilerParams(
            dimension_semantics=("parallel",),        # v7x: shard tiles over 2 TCs
            vmem_limit_bytes=int(cap * 0.9)),         # v5e: lift 16 MiB scoped default
        cost_estimate=pl.CostEstimate(
            flops=flops, transcendentals=0, bytes_accessed=bytes_accessed),
    )(state, action, w1s, w1a, b1, w2, b2, wh, bh)

    next_state = out[:, :state_size]
    reward = out[:, state_size:]
    return next_state, reward


def environment_model_forward(state, action, prepared):
    """state: (B, state_size) f32, action: (B, action_size) f32,
    prepared: output of prepare_params.  Returns (next_state, reward)."""
    try:
        return _forward(state, action, prepared, 1)   # single-buffered weights
    except Exception:
        # jax version without BlockSpec.pipeline_mode: default double-buffering.
        return _forward(state, action, prepared, 2)


# ---------------------------------------------------------------------------
# Test scaffolding
# ---------------------------------------------------------------------------
def init_params(key, state_size, action_size, hidden_size):
    """Deterministic synthetic init matching nn.Linear parameter shapes."""
    ks = jax.random.split(key, 8)

    def lin(kw, kb, out_f, in_f):
        bound = 1.0 / (in_f ** 0.5)
        w = jax.random.uniform(kw, (out_f, in_f), jnp.float32, -bound, bound)
        b = jax.random.uniform(kb, (out_f,), jnp.float32, -bound, bound)
        return w, b

    fc1_w, fc1_b = lin(ks[0], ks[1], hidden_size, state_size + action_size)
    fc2_w, fc2_b = lin(ks[2], ks[3], hidden_size, hidden_size)
    ns_w, ns_b = lin(ks[4], ks[5], state_size, hidden_size)
    r_w, r_b = lin(ks[6], ks[7], 1, hidden_size)
    return {
        "fc1_w": fc1_w, "fc1_b": fc1_b,
        "fc2_w": fc2_w, "fc2_b": fc2_b,
        "next_state_w": ns_w, "next_state_b": ns_b,
        "reward_w": r_w, "reward_b": r_b,
    }


def reference_forward(state, action, params):
    x = jnp.concatenate([state, action], axis=-1)
    x = jnp.maximum(x @ params["fc1_w"].T + params["fc1_b"], 0.0)
    x = jnp.maximum(x @ params["fc2_w"].T + params["fc2_b"], 0.0)
    ns = x @ params["next_state_w"].T + params["next_state_b"]
    r = x @ params["reward_w"].T + params["reward_b"]
    return ns, r


if __name__ == "__main__":
    B, state_size, action_size, hidden_size = 2, 8, 4, 32
    key = jax.random.PRNGKey(0)
    k_s, k_a, k_p = jax.random.split(key, 3)

    state = jax.random.normal(k_s, (B, state_size), jnp.float32)
    action = jax.random.normal(k_a, (B, action_size), jnp.float32)
    params = init_params(k_p, state_size, action_size, hidden_size)

    ns_ref, r_ref = reference_forward(state, action, params)

    # f32 compute path (precision=HIGHEST on the MXU): tight tolerance.
    prep_f32 = prepare_params(params, state_size, compute_dtype=jnp.float32)
    ns32, r32 = environment_model_forward(state, action, prep_f32)
    jax.block_until_ready((ns32, r32))
    assert ns32.shape == (B, state_size) and r32.shape == (B, 1)
    assert jnp.allclose(ns32, ns_ref, atol=1e-5, rtol=1e-5)
    assert jnp.allclose(r32, r_ref, atol=1e-5, rtol=1e-5)

    # bf16 compute path (v6e/v7x MXU-native), f32 accumulation — looser tolerance.
    prep_bf16 = prepare_params(params, state_size, compute_dtype=jnp.bfloat16)
    ns16, r16 = environment_model_forward(state, action, prep_bf16)
    jax.block_until_ready((ns16, r16))
    assert ns16.shape == (B, state_size) and r16.shape == (B, 1)
    assert jnp.allclose(ns16, ns_ref, atol=5e-2, rtol=5e-2)
    assert jnp.allclose(r16, r_ref, atol=5e-2, rtol=5e-2)

    print("KERNEL_OK")
</pallas_src>

<mosaic_0001>
module attributes {stable_mosaic.version = 11 : i64} {
  func.func @env_model_kernel(%arg0: i32, %arg1: memref<8x8xf32, #tpu.memory_space<vmem>>, %arg2: memref<8x4xf32, #tpu.memory_space<vmem>>, %arg3: memref<8x32xf32, #tpu.memory_space<vmem>>, %arg4: memref<4x32xf32, #tpu.memory_space<vmem>>, %arg5: memref<1x32xf32, #tpu.memory_space<vmem>>, %arg6: memref<32x32xf32, #tpu.memory_space<vmem>>, %arg7: memref<1x32xf32, #tpu.memory_space<vmem>>, %arg8: memref<32x9xf32, #tpu.memory_space<vmem>>, %arg9: memref<1x9xf32, #tpu.memory_space<vmem>>, %arg10: memref<8x9xf32, #tpu.memory_space<vmem>>) attributes {dimension_semantics = [#tpu.dimension_semantics<parallel>], iteration_bounds = array<i64: 1>, scalar_prefetch = 0 : i64, scratch_operands = 0 : i64, tpu.core_type = #tpu.core_type<tc>, window_params = [{transform_indices = @transform_0, window_bounds = array<i64: 8, 8>}, {transform_indices = @transform_1, window_bounds = array<i64: 8, 4>}, {pipeline_mode = #tpu.pipeline_mode<synchronous>, transform_indices = @transform_2, window_bounds = array<i64: 8, 32>}, {pipeline_mode = #tpu.pipeline_mode<synchronous>, transform_indices = @transform_3, window_bounds = array<i64: 4, 32>}, {pipeline_mode = #tpu.pipeline_mode<synchronous>, transform_indices = @transform_4, window_bounds = array<i64: 1, 32>}, {pipeline_mode = #tpu.pipeline_mode<synchronous>, transform_indices = @transform_5, window_bounds = array<i64: 32, 32>}, {pipeline_mode = #tpu.pipeline_mode<synchronous>, transform_indices = @transform_6, window_bounds = array<i64: 1, 32>}, {pipeline_mode = #tpu.pipeline_mode<synchronous>, transform_indices = @transform_7, window_bounds = array<i64: 32, 9>}, {pipeline_mode = #tpu.pipeline_mode<synchronous>, transform_indices = @transform_8, window_bounds = array<i64: 1, 9>}, {transform_indices = @transform_9, window_bounds = array<i64: 8, 9>}]} {
    %c0 = arith.constant 0 : index
    %c0_0 = arith.constant 0 : index
    %0 = vector.load %arg1[%c0, %c0_0] : memref<8x8xf32, #tpu.memory_space<vmem>>, vector<8x8xf32>
    %c0_1 = arith.constant 0 : index
    %c0_2 = arith.constant 0 : index
    %1 = vector.load %arg2[%c0_1, %c0_2] : memref<8x4xf32, #tpu.memory_space<vmem>>, vector<8x4xf32>
    %c0_3 = arith.constant 0 : index
    %c0_4 = arith.constant 0 : index
    %2 = vector.load %arg3[%c0_3, %c0_4] : memref<8x32xf32, #tpu.memory_space<vmem>>, vector<8x32xf32>
    %cst = arith.constant dense<0.000000e+00> : vector<8x32xf32>
    %3 = tpu.matmul %0, %2, %cst {dimension_numbers = #tpu.dot_dimension_numbers<[1], [0], [0], [1], [0, 0, 1, 1], [], []>, precision = #tpu.contract_precision<fp32>} : vector<8x8xf32>, vector<8x32xf32>, vector<8x32xf32> -> vector<8x32xf32>
    %c0_5 = arith.constant 0 : index
    %c0_6 = arith.constant 0 : index
    %4 = vector.load %arg4[%c0_5, %c0_6] : memref<4x32xf32, #tpu.memory_space<vmem>>, vector<4x32xf32>
    %cst_7 = arith.constant dense<0.000000e+00> : vector<8x32xf32>
    %5 = tpu.matmul %1, %4, %cst_7 {dimension_numbers = #tpu.dot_dimension_numbers<[1], [0], [0], [1], [0, 0, 1, 1], [], []>, precision = #tpu.contract_precision<fp32>} : vector<8x4xf32>, vector<4x32xf32>, vector<8x32xf32> -> vector<8x32xf32>
    %6 = arith.addf %3, %5 : vector<8x32xf32>
    %c0_8 = arith.constant 0 : index
    %c0_9 = arith.constant 0 : index
    %7 = vector.load %arg5[%c0_8, %c0_9] : memref<1x32xf32, #tpu.memory_space<vmem>>, vector<1x32xf32>
    %8 = vector.broadcast %7 : vector<1x32xf32> to vector<8x32xf32>
    %9 = arith.addf %6, %8 : vector<8x32xf32>
    %cst_10 = arith.constant 0.000000e+00 : f32
    %10 = vector.broadcast %cst_10 : f32 to vector<8x32xf32>
    %11 = arith.maximumf %9, %10 : vector<8x32xf32>
    %c0_11 = arith.constant 0 : index
    %c0_12 = arith.constant 0 : index
    %12 = vector.load %arg6[%c0_11, %c0_12] : memref<32x32xf32, #tpu.memory_space<vmem>>, vector<32x32xf32>
    %cst_13 = arith.constant dense<0.000000e+00> : vector<8x32xf32>
    %13 = tpu.matmul %11, %12, %cst_13 {dimension_numbers = #tpu.dot_dimension_numbers<[1], [0], [0], [1], [0, 0, 1, 1], [], []>, precision = #tpu.contract_precision<fp32>} : vector<8x32xf32>, vector<32x32xf32>, vector<8x32xf32> -> vector<8x32xf32>
    %c0_14 = arith.constant 0 : index
    %c0_15 = arith.constant 0 : index
    %14 = vector.load %arg7[%c0_14, %c0_15] : memref<1x32xf32, #tpu.memory_space<vmem>>, vector<1x32xf32>
    %15 = vector.broadcast %14 : vector<1x32xf32> to vector<8x32xf32>
    %16 = arith.addf %13, %15 : vector<8x32xf32>
    %cst_16 = arith.constant 0.000000e+00 : f32
    %17 = vector.broadcast %cst_16 : f32 to vector<8x32xf32>
    %18 = arith.maximumf %16, %17 : vector<8x32xf32>
    %c0_17 = arith.constant 0 : index
    %c0_18 = arith.constant 0 : index
    %19 = vector.load %arg8[%c0_17, %c0_18] : memref<32x9xf32, #tpu.memory_space<vmem>>, vector<32x9xf32>
    %cst_19 = arith.constant dense<0.000000e+00> : vector<8x9xf32>
    %20 = tpu.matmul %18, %19, %cst_19 {dimension_numbers = #tpu.dot_dimension_numbers<[1], [0], [0], [1], [0, 0, 1, 1], [], []>, precision = #tpu.contract_precision<fp32>} : vector<8x32xf32>, vector<32x9xf32>, vector<8x9xf32> -> vector<8x9xf32>
    %c0_20 = arith.constant 0 : index
    %c0_21 = arith.constant 0 : index
    %21 = vector.load %arg9[%c0_20, %c0_21] : memref<1x9xf32, #tpu.memory_space<vmem>>, vector<1x9xf32>
    %22 = vector.broadcast %21 : vector<1x9xf32> to vector<8x9xf32>
    %23 = arith.addf %20, %22 : vector<8x9xf32>
    %c0_22 = arith.constant 0 : index
    %c0_23 = arith.constant 0 : index
    %24 = vector.load %arg10[%c0_22, %c0_23] : memref<8x9xf32, #tpu.memory_space<vmem>>, vector<8x9xf32>
    tpu.vector_store %arg10[%c0_22, %c0_23], %23 {strides = array<i32>} : memref<8x9xf32, #tpu.memory_space<vmem>>, vector<8x9xf32>,
    return
  }
  func.func @transform_0(%arg0: i32) -> (i32, i32) {
    %c0_i32 = arith.constant 0 : i32
    %c0_i32_0 = arith.constant 0 : i32
    return %arg0, %c0_i32 : i32, i32
  }
  func.func @transform_1(%arg0: i32) -> (i32, i32) {
    %c0_i32 = arith.constant 0 : i32
    %c0_i32_0 = arith.constant 0 : i32
    return %arg0, %c0_i32 : i32, i32
  }
  func.func @transform_2(%arg0: i32) -> (i32, i32) {
    %c0_i32 = arith.constant 0 : i32
    %c0_i32_0 = arith.constant 0 : i32
    %c0_i32_1 = arith.constant 0 : i32
    return %c0_i32, %c0_i32_0 : i32, i32
  }
  func.func @transform_3(%arg0: i32) -> (i32, i32) {
    %c0_i32 = arith.constant 0 : i32
    %c0_i32_0 = arith.constant 0 : i32
    %c0_i32_1 = arith.constant 0 : i32
    return %c0_i32, %c0_i32_0 : i32, i32
  }
  func.func @transform_4(%arg0: i32) -> (i32, i32) {
    %c0_i32 = arith.constant 0 : i32
    %c0_i32_0 = arith.constant 0 : i32
    %c0_i32_1 = arith.constant 0 : i32
    return %c0_i32, %c0_i32_0 : i32, i32
  }
  func.func @transform_5(%arg0: i32) -> (i32, i32) {
    %c0_i32 = arith.constant 0 : i32
    %c0_i32_0 = arith.constant 0 : i32
    %c0_i32_1 = arith.constant 0 : i32
    return %c0_i32, %c0_i32_0 : i32, i32
  }
  func.func @transform_6(%arg0: i32) -> (i32, i32) {
    %c0_i32 = arith.constant 0 : i32
    %c0_i32_0 = arith.constant 0 : i32
    %c0_i32_1 = arith.constant 0 : i32
    return %c0_i32, %c0_i32_0 : i32, i32
  }
  func.func @transform_7(%arg0: i32) -> (i32, i32) {
    %c0_i32 = arith.constant 0 : i32
    %c0_i32_0 = arith.constant 0 : i32
    %c0_i32_1 = arith.constant 0 : i32
    return %c0_i32, %c0_i32_0 : i32, i32
  }
  func.func @transform_8(%arg0: i32) -> (i32, i32) {
    %c0_i32 = arith.constant 0 : i32
    %c0_i32_0 = arith.constant 0 : i32
    %c0_i32_1 = arith.constant 0 : i32
    return %c0_i32, %c0_i32_0 : i32, i32
  }
  func.func @transform_9(%arg0: i32) -> (i32, i32) {
    %c0_i32 = arith.constant 0 : i32
    %c0_i32_0 = arith.constant 0 : i32
    return %arg0, %c0_i32 : i32, i32
  }
}

module attributes {stable_mosaic.version = 11 : i64} {
  func.func @env_model_kernel(%arg0: i32, %arg1: memref<8x8xf32, #tpu.memory_space<vmem>>, %arg2: memref<8x4xf32, #tpu.memory_space<vmem>>, %arg3: memref<8x32xf32, #tpu.memory_space<vmem>>, %arg4: memref<4x32xf32, #tpu.memory_space<vmem>>, %arg5: memref<1x32xf32, #tpu.memory_space<vmem>>, %arg6: memref<32x32xf32, #tpu.memory_space<vmem>>, %arg7: memref<1x32xf32, #tpu.memory_space<vmem>>, %arg8: memref<32x9xf32, #tpu.memory_space<vmem>>, %arg9: memref<1x9xf32, #tpu.memory_space<vmem>>, %arg10: memref<8x9xf32, #tpu.memory_space<vmem>>) attributes {dimension_semantics = [#tpu.dimension_semantics<parallel>], iteration_bounds = array<i64: 1>, scalar_prefetch = 0 : i64, scratch_operands = 0 : i64, tpu.core_type = #tpu.core_type<tc>, window_params = [{transform_indices = @transform_0, window_bounds = array<i64: 8, 8>}, {transform_indices = @transform_1, window_bounds = array<i64: 8, 4>}, {pipeline_mode = #tpu.pipeline_mode<synchronous>, transform_indices = @transform_2, window_bounds = array<i64: 8, 32>}, {pipeline_mode = #tpu.pipeline_mode<synchronous>, transform_indices = @transform_3, window_bounds = array<i64: 4, 32>}, {pipeline_mode = #tpu.pipeline_mode<synchronous>, transform_indices = @transform_4, window_bounds = array<i64: 1, 32>}, {pipeline_mode = #tpu.pipeline_mode<synchronous>, transform_indices = @transform_5, window_bounds = array<i64: 32, 32>}, {pipeline_mode = #tpu.pipeline_mode<synchronous>, transform_indices = @transform_6, window_bounds = array<i64: 1, 32>}, {pipeline_mode = #tpu.pipeline_mode<synchronous>, transform_indices = @transform_7, window_bounds = array<i64: 32, 9>}, {pipeline_mode = #tpu.pipeline_mode<synchronous>, transform_indices = @transform_8, window_bounds = array<i64: 1, 9>}, {transform_indices = @transform_9, window_bounds = array<i64: 8, 9>}]} {
    %c0 = arith.constant 0 : index
    %c0_0 = arith.constant 0 : index
    %0 = vector.load %arg1[%c0, %c0_0] : memref<8x8xf32, #tpu.memory_space<vmem>>, vector<8x8xf32>
    %c0_1 = arith.constant 0 : index
    %c0_2 = arith.constant 0 : index
    %1 = vector.load %arg2[%c0_1, %c0_2] : memref<8x4xf32, #tpu.memory_space<vmem>>, vector<8x4xf32>
    %c0_3 = arith.constant 0 : index
    %c0_4 = arith.constant 0 : index
    %2 = vector.load %arg3[%c0_3, %c0_4] : memref<8x32xf32, #tpu.memory_space<vmem>>, vector<8x32xf32>
    %cst = arith.constant dense<0.000000e+00> : vector<8x32xf32>
    %3 = tpu.matmul %0, %2, %cst {dimension_numbers = #tpu.dot_dimension_numbers<[1], [0], [0], [1], [0, 0, 1, 1], [], []>, precision = #tpu.contract_precision<fp32>} : vector<8x8xf32>, vector<8x32xf32>, vector<8x32xf32> -> vector<8x32xf32>
    %c0_5 = arith.constant 0 : index
    %c0_6 = arith.constant 0 : index
    %4 = vector.load %arg4[%c0_5, %c0_6] : memref<4x32xf32, #tpu.memory_space<vmem>>, vector<4x32xf32>
    %cst_7 = arith.constant dense<0.000000e+00> : vector<8x32xf32>
    %5 = tpu.matmul %1, %4, %cst_7 {dimension_numbers = #tpu.dot_dimension_numbers<[1], [0], [0], [1], [0, 0, 1, 1], [], []>, precision = #tpu.contract_precision<fp32>} : vector<8x4xf32>, vector<4x32xf32>, vector<8x32xf32> -> vector<8x32xf32>
    %6 = arith.addf %3, %5 : vector<8x32xf32>
    %c0_8 = arith.constant 0 : index
    %c0_9 = arith.constant 0 : index
    %7 = vector.load %arg5[%c0_8, %c0_9] : memref<1x32xf32, #tpu.memory_space<vmem>>, vector<1x32xf32>
    %8 = vector.broadcast %7 : vector<1x32xf32> to vector<8x32xf32>
    %9 = arith.addf %6, %8 : vector<8x32xf32>
    %cst_10 = arith.constant 0.000000e+00 : f32
    %10 = vector.broadcast %cst_10 : f32 to vector<8x32xf32>
    %11 = arith.maximumf %9, %10 : vector<8x32xf32>
    %c0_11 = arith.constant 0 : index
    %c0_12 = arith.constant 0 : index
    %12 = vector.load %arg6[%c0_11, %c0_12] : memref<32x32xf32, #tpu.memory_space<vmem>>, vector<32x32xf32>
    %cst_13 = arith.constant dense<0.000000e+00> : vector<8x32xf32>
    %13 = tpu.matmul %11, %12, %cst_13 {dimension_numbers = #tpu.dot_dimension_numbers<[1], [0], [0], [1], [0, 0, 1, 1], [], []>, precision = #tpu.contract_precision<fp32>} : vector<8x32xf32>, vector<32x32xf32>, vector<8x32xf32> -> vector<8x32xf32>
    %c0_14 = arith.constant 0 : index
    %c0_15 = arith.constant 0 : index
    %14 = vector.load %arg7[%c0_14, %c0_15] : memref<1x32xf32, #tpu.memory_space<vmem>>, vector<1x32xf32>
    %15 = vector.broadcast %14 : vector<1x32xf32> to vector<8x32xf32>
    %16 = arith.addf %13, %15 : vector<8x32xf32>
    %cst_16 = arith.constant 0.000000e+00 : f32
    %17 = vector.broadcast %cst_16 : f32 to vector<8x32xf32>
    %18 = arith.maximumf %16, %17 : vector<8x32xf32>
    %c0_17 = arith.constant 0 : index
    %c0_18 = arith.constant 0 : index
    %19 = vector.load %arg8[%c0_17, %c0_18] : memref<32x9xf32, #tpu.memory_space<vmem>>, vector<32x9xf32>
    %cst_19 = arith.constant dense<0.000000e+00> : vector<8x9xf32>
    %20 = tpu.matmul %18, %19, %cst_19 {dimension_numbers = #tpu.dot_dimension_numbers<[1], [0], [0], [1], [0, 0, 1, 1], [], []>, precision = #tpu.contract_precision<fp32>} : vector<8x32xf32>, vector<32x9xf32>, vector<8x9xf32> -> vector<8x9xf32>
    %c0_20 = arith.constant 0 : index
    %c0_21 = arith.constant 0 : index
    %21 = vector.load %arg9[%c0_20, %c0_21] : memref<1x9xf32, #tpu.memory_space<vmem>>, vector<1x9xf32>
    %22 = vector.broadcast %21 : vector<1x9xf32> to vector<8x9xf32>
    %23 = arith.addf %20, %22 : vector<8x9xf32>
    %c0_22 = arith.constant 0 : index
    %c0_23 = arith.constant 0 : index
    %24 = vector.load %arg10[%c0_22, %c0_23] : memref<8x9xf32, #tpu.memory_space<vmem>>, vector<8x9xf32>
    tpu.vector_store %arg10[%c0_22, %c0_23], %23 {strides = array<i32>} : memref<8x9xf32, #tpu.memory_space<vmem>>, vector<8x9xf32>,
    return
  }
  func.func @transform_0(%arg0: i32) -> (i32, i32) {
    %c0_i32 = arith.constant 0 : i32
    %c0_i32_0 = arith.constant 0 : i32
    return %arg0, %c0_i32 : i32, i32
  }
  func.func @transform_1(%arg0: i32) -> (i32, i32) {
    %c0_i32 = arith.constant 0 : i32
    %c0_i32_0 = arith.constant 0 : i32
    return %arg0, %c0_i32 : i32, i32
  }
  func.func @transform_2(%arg0: i32) -> (i32, i32) {
    %c0_i32 = arith.constant 0 : i32
    %c0_i32_0 = arith.constant 0 : i32
    %c0_i32_1 = arith.constant 0 : i32
    return %c0_i32, %c0_i32_0 : i32, i32
  }
  func.func @transform_3(%arg0: i32) -> (i32, i32) {
    %c0_i32 = arith.constant 0 : i32
    %c0_i32_0 = arith.constant 0 : i32
    %c0_i32_1 = arith.constant 0 : i32
    return %c0_i32, %c0_i32_0 : i32, i32
  }
  func.func @transform_4(%arg0: i32) -> (i32, i32) {
    %c0_i32 = arith.constant 0 : i32
    %c0_i32_0 = arith.constant 0 : i32
    %c0_i32_1 = arith.constant 0 : i32
    return %c0_i32, %c0_i32_0 : i32, i32
  }
  func.func @transform_5(%arg0: i32) -> (i32, i32) {
    %c0_i32 = arith.constant 0 : i32
    %c0_i32_0 = arith.constant 0 : i32
    %c0_i32_1 = arith.constant 0 : i32
    return %c0_i32, %c0_i32_0 : i32, i32
  }
  func.func @transform_6(%arg0: i32) -> (i32, i32) {
    %c0_i32 = arith.constant 0 : i32
    %c0_i32_0 = arith.constant 0 : i32
    %c0_i32_1 = arith.constant 0 : i32
    return %c0_i32, %c0_i32_0 : i32, i32
  }
  func.func @transform_7(%arg0: i32) -> (i32, i32) {
    %c0_i32 = arith.constant 0 : i32
    %c0_i32_0 = arith.constant 0 : i32
    %c0_i32_1 = arith.constant 0 : i32
    return %c0_i32, %c0_i32_0 : i32, i32
  }
  func.func @transform_8(%arg0: i32) -> (i32, i32) {
    %c0_i32 = arith.constant 0 : i32
    %c0_i32_0 = arith.constant 0 : i32
    %c0_i32_1 = arith.constant 0 : i32
    return %c0_i32, %c0_i32_0 : i32, i32
  }
  func.func @transform_9(%arg0: i32) -> (i32, i32) {
    %c0_i32 = arith.constant 0 : i32
    %c0_i32_0 = arith.constant 0 : i32
    return %arg0, %c0_i32 : i32, i32
  }
}

</mosaic_0001>

<bundles_post_ra>
// kernel: _forward.1
= control target key start
LH: loop header
LB: loop body
LE: loop exit
PB: predicated region body
PF: predicated region fallthrough
CT: control target
= control target key end

     0   :  { %vm40_vm0 = vcmask 1043456   ;;  %v2273_v2 = vmov 0.0   ;;  %vm2274_vm1 = vmmov 0   ;;  %vm36_vm2 = vcmask 31744   ;;  %s2603_s0 = inlined_call_operand.vmem [shape: f32[2,8], index: 0, kind: input, shape index: {}]   ;;  %s2604_s1 = inlined_call_operand.vmem [shape: f32[2,4], index: 1, kind: input, shape index: {}]   ;;  %s2605_s2 = inlined_call_operand.vmem [shape: f32[8,32], index: 2, kind: input, shape index: {}]   ;;  %s2606_s3 = inlined_call_operand.vmem [shape: f32[4,32], index: 3, kind: input, shape index: {}]   ;;  %s2607_s4 = inlined_call_operand.vmem [shape: f32[1,32], index: 4, kind: input, shape index: {}]   ;;  %s2608_s5 = inlined_call_operand.vmem [shape: f32[32,32], index: 5, kind: input, shape index: {}]   ;;  %s2609_s6 = inlined_call_operand.vmem [shape: f32[1,32], index: 6, kind: input, shape index: {}]   ;;  %s2610_s7 = inlined_call_operand.vmem [shape: f32[32,9], index: 7, kind: input, shape index: {}]   ;;  %s2611_s8 = inlined_call_operand.vmem [shape: f32[1,9], index: 8, kind: input, shape index: {}]   ;;  %s2612_s9 = inlined_call_operand.vmem [shape: f32[2,9], index: 9, kind: output, shape index: {}]  }
   0x1   :  { %v35_v0 = vld [vmem:[%s2606_s3] sm:$0xf]  ;;  %2079 = vmatprep.subr.mxu0 %v2273_v2  ;;  %2081 = vmatprep.mubr.msk.f32.mxu0 %vm2274_vm1, %v2273_v2  ;;  %vm490_vm3 = vcmask 64512   ;;  %v952_v28 = vld [vmem:[%s2608_s5 + $0x18] sm:$0xff]  ;;  %v951_v30 = vld [vmem:[%s2608_s5 + $0x10] sm:$0xff]  ;;  %vm960_vm4 = vcmask 261120  }
   0x2   :  { %v33_v1 = vld [vmem:[%s2604_s1] sm:$0xff]  ;;  %v42_v3 = vsel %vm40_vm0, %v35_v0, 0  ;;  %2084 = vmatprep.subr.mxu1 %v2273_v2  ;;  %2086 = vmatprep.mubr.msk.f32.mxu1 %vm2274_vm1, %v2273_v2  ;;  %v2382_v29 = vand.u32 4294901760, %v952_v28  ;;  %v2390_v32 = vand.u32 4294901760, %v951_v30  ;;  %v950_v33 = vld [vmem:[%s2608_s5 + $0x8] sm:$0xff]  ;;  %vm1949_vm5 = vcmask 72704  }
   0x3   :  { %v34_v4 = vld [vmem:[%s2605_s2] sm:$0xff]  ;;  %v75_v6 = vand.u32 4294901760, %v42_v3  ;;  %v38_v7 = vsel %vm36_vm2, %v33_v1, 0  ;;  %v2401_v36 = vand.u32 4294901760, %v950_v33 }
   0x4   :  { %v32_v5 = vld [vmem:[%s2603_s0] sm:$0xff]  ;;  %v110_v9 = vand.u32 4294901760, %v38_v7  ;;  %v525_v10 = vand.u32 4294901760, %v34_v4  ;;  %v2388_v31 = vsub.f32 %v952_v28, %v2382_v29  ;;  %v2399_v35 = vsub.f32 %v951_v30, %v2390_v32 }
   0x5   :  { %v492_v8 = vsel %vm490_vm3, %v32_v5, 0  ;;  %2080 = vmatpush3.msra.mxu0 %v75_v6  ;;  %v152_v11 = vsub.f32 %v42_v3, %v75_v6  ;;  %v949_v37 = vld [vmem:[%s2608_s5] sm:$0xff]  ;;  %v2413_v40 = vsub.f32 %v950_v33, %v2401_v36 }
   0x6   :  { %2089 = vmatprep.subr.mxu0 %v2273_v2  ;;  %v111_v12 = vsub.f32 %v38_v7, %v110_v9  ;;  %v560_v13 = vand.u32 4294901760, %v492_v8  ;;  %v602_v16 = vsub.f32 %v34_v4, %v525_v10  ;;  %v1070_v34 = vand.u32 4294901760, %v2388_v31 }
   0x7   :  { %v153_v14 = vand.u32 4294901760, %v152_v11  ;;  %v1077_v39 = vand.u32 4294901760, %v2399_v35  ;;  %v2415_v41 = vand.u32 4294901760, %v949_v37  ;;  %v1084_v44 = vand.u32 4294901760, %v2413_v40 }
   0x8   :  { %v112_v15 = vand.u32 4294901760, %v111_v12  ;;  %v561_v19 = vsub.f32 %v492_v8, %v560_v13  ;;  %v603_v22 = vand.u32 4294901760, %v602_v16  ;;  %v1071_v38 = vsub.f32 %v2388_v31, %v1070_v34 }
   0x9   :  { %v154_v17 = vsub.f32 %v152_v11, %v153_v14  ;;  %v1078_v43 = vsub.f32 %v2399_v35, %v1077_v39  ;;  %v2424_v45 = vsub.f32 %v949_v37, %v2415_v41  ;;  %v1085_v47 = vsub.f32 %v2413_v40, %v1084_v44 }
   0xa   :  { %v113_v18 = vsub.f32 %v111_v12, %v112_v15  ;;  %v562_v23 = vand.u32 4294901760, %v561_v19  ;;  %v604_v24 = vsub.f32 %v602_v16, %v603_v22  ;;  %v1072_v42 = vand.u32 4294901760, %v1071_v38 }
   0xb   :  { %v155_v20 = vand.u32 4294901760, %v154_v17  ;;  %v1079_v46 = vand.u32 4294901760, %v1078_v43  ;;  %v1091_v48 = vand.u32 4294901760, %v2424_v45  ;;  %v1086_v49 = vand.u32 4294901760, %v1085_v47 }
   0xc   :  { %v114_v21 = vand.u32 4294901760, %v113_v18  ;;  %v563_v25 = vsub.f32 %v561_v19, %v562_v23  ;;  %v605_v26 = vand.u32 4294901760, %v604_v24 }
   0xd   :  { %2085 = vmatpush3.msra.mxu1 %v155_v20  ;;  %v1092_v50 = vsub.f32 %v2424_v45, %v1091_v48 }
   0xe   :  { %2082 = vmatmul.mubr.f32.vlgmr.msra.gmra.mxu0 %v114_v21  ;;  %2087 = vmatmul.mubr.f32.vlgmr.msra.gmra.mxu1 %v110_v9  ;;  %v564_v27 = vand.u32 4294901760, %v563_v25  ;;  %v1992_v21 = vld [vmem:[%s2607_s4] ss:$0 sm:$0xff] }
   0xf   :  { %2090 = vmatpush3.msra.mxu0 %v152_v11  ;;  %2094 = vmatprep.subr.mxu1 %v2273_v2  ;;  %v1093_v51 = vand.u32 4294901760, %v1092_v50 }
  0x10   :  { %2095 = vmatpush3.msra.mxu1 %v75_v6  ;;  %2091 = vmatprep.mubr.msk.f32.mxu0 %vm2274_vm1, %v2273_v2 }
  0x11   :  { %2099 = vmatprep.subr.mxu0 %v2273_v2  ;;  %2096 = vmatprep.mubr.msk.f32.mxu1 %vm2274_vm1, %v2273_v2 }
  0x12   :  { %2092 = vmatmul.mubr.f32.vlgmr.msra.gmra.mxu0 %v111_v12  ;;  %2097 = vmatmul.mubr.f32.vlgmr.msra.gmra.mxu1 %v112_v15 }
  0x13   :  { %2100 = vmatpush3.msra.mxu0 %v153_v14  ;;  %2104 = vmatprep.subr.mxu1 %v2273_v2 }
  0x14   :  { %2105 = vmatpush3.msra.mxu1 %v75_v6  ;;  %2101 = vmatprep.mubr.msk.f32.mxu0 %vm2274_vm1, %v2273_v2 }
  0x15   :  { %2109 = vmatprep.subr.mxu0 %v2273_v2  ;;  %2106 = vmatprep.mubr.msk.f32.mxu1 %vm2274_vm1, %v2273_v2 }
  0x16   :  { %2102 = vmatmul.mubr.f32.vlgmr.msra.gmra.mxu0 %v110_v9  ;;  %2107 = vmatmul.mubr.f32.vlgmr.msra.gmra.mxu1 %v110_v9 }
  0x17   :  { %2110 = vmatpush3.msra.mxu0 %v525_v10  ;;  %2114 = vmatprep.subr.mxu1 %v2273_v2 }
  0x18   :  { %2115 = vmatpush3.msra.mxu1 %v605_v26  ;;  %2111 = vmatprep.mubr.msk.f32.mxu0 %vm2274_vm1, %v2273_v2 }
  0x19   :  { %2119 = vmatprep.subr.mxu0 %v2273_v2  ;;  %2116 = vmatprep.mubr.msk.f32.mxu1 %vm2274_vm1, %v2273_v2 }
  0x1a   :  { %2112 = vmatmul.mubr.f32.vlgmr.msra.gmra.mxu0 %v564_v27  ;;  %2117 = vmatmul.mubr.f32.vlgmr.msra.gmra.mxu1 %v560_v13 }
  0x1b   :  { %2120 = vmatpush3.msra.mxu0 %v602_v16  ;;  %2124 = vmatprep.subr.mxu1 %v2273_v2 }
  0x1c   :  { %2125 = vmatpush3.msra.mxu1 %v525_v10  ;;  %2121 = vmatprep.mubr.msk.f32.mxu0 %vm2274_vm1, %v2273_v2 }
  0x1d   :  { %2129 = vmatprep.subr.mxu0 %v2273_v2  ;;  %2126 = vmatprep.mubr.msk.f32.mxu1 %vm2274_vm1, %v2273_v2 }
  0x1e   :  { %2122 = vmatmul.mubr.f32.vlgmr.msra.gmra.mxu0 %v561_v19  ;;  %2127 = vmatmul.mubr.f32.vlgmr.msra.gmra.mxu1 %v562_v23 }
  0x1f   :  { %2130 = vmatpush3.msra.mxu0 %v603_v22  ;;  %2134 = vmatprep.subr.mxu1 %v2273_v2 }
  0x20   :  { %2135 = vmatpush3.msra.mxu1 %v525_v10  ;;  %2131 = vmatprep.mubr.msk.f32.mxu0 %vm2274_vm1, %v2273_v2 }
  0x21   :  { %2136 = vmatprep.mubr.msk.f32.mxu1 %vm2274_vm1, %v2273_v2  ;;  %2150 = vmatprep.subr.mxu1 %v2273_v2 }
  0x22   :  { %2132 = vmatmul.mubr.f32.vlgmr.msra.gmra.mxu0 %v560_v13  ;;  %2137 = vmatmul.mubr.f32.vlgmr.msra.gmra.mxu1 %v560_v13 }
  0x23   :  { %2139 = vmatprep.subr.mxu0 %v2273_v2  ;;  %2158 = vmatprep.mubr.msk.f32.mxu1 %vm2274_vm1, %v2273_v2 }
  0x24   :  { %2147 = vmatprep.mubr.msk.f32.mxu0 %vm2274_vm1, %v2273_v2  ;;  %2140 = vmatpush3.msra.mxu0 %v2382_v29 }
  0x25   :  { %2141 = vmatprep.subr.mxu0 %v2273_v2  ;;  %2151 = vmatpush3.msra.mxu1 %v1072_v42  ;;  %v1450_v42 = vld [vmem:[%s2610_s7] sm:$0xff] }
  0x26   :  { %2142 = vmatpush3.msra.mxu0 %v2390_v32  ;;  %2152 = vmatprep.subr.mxu1 %v2273_v2 }
  0x27   :  { %2143 = vmatprep.subr.mxu0 %v2273_v2  ;;  %2153 = vmatpush3.msra.mxu1 %v1079_v46  ;;  %v2527_v46 = vand.u32 4294901760, %v1450_v42 }
  0x28   :  { %2144 = vmatpush3.msra.mxu0 %v2401_v36  ;;  %2154 = vmatprep.subr.mxu1 %v2273_v2 }
  0x29   :  { %2145 = vmatprep.subr.mxu0 %v2273_v2  ;;  %2155 = vmatpush3.msra.mxu1 %v1086_v49  ;;  %v2536_v50 = vsub.f32 %v1450_v42, %v2527_v46 }
  0x2a   :  { %2146 = vmatpush3.msra.mxu0 %v2415_v41  ;;  %2156 = vmatprep.subr.mxu1 %v2273_v2 }
  0x2b   :  { %2161 = vmatprep.subr.mxu0 %v2273_v2  ;;  %2157 = vmatpush3.msra.mxu1 %v1093_v51 }
  0x2c   :  { %2172 = vmatprep.subr.mxu1 %v2273_v2 }
  0xce   :  { %v116_v52 = vpop.f32.mrf.mxu0  ;;  %v192_v53 = vpop.f32.mrf.mxu1 }
  0xcf   :  { %v193_v54 = vadd.f32 %v192_v53, %v116_v52  ;;  %v1591_v53 = vand.u32 4294901760, %v2536_v50 }
  0xd0   :  { %v2083_v55 = vpop.f32.mrf.mxu0  ;;  %v2088_v56 = vpop.f32.mrf.mxu1 }
  0xd1   :  { %v1592_v55 = vsub.f32 %v2536_v50, %v1591_v53 }
  0xd2   :  { %v266_v57 = vpop.f32.mrf.mxu0  ;;  %v340_v58 = vpop.f32.mrf.mxu1 }
  0xd3   :  { %v267_v59 = vadd.f32 %v266_v57, %v193_v54  ;;  %v1593_v56 = vand.u32 4294901760, %v1592_v55 }
  0xd4   :  { %v2093_v60 = vpop.f32.mrf.mxu0  ;;  %v2098_v61 = vpop.f32.mrf.mxu1 }
  0xd5   :  { %v341_v62 = vadd.f32 %v340_v58, %v267_v59 }
  0xd6   :  { %v414_v63 = vpop.f32.mrf.mxu0  ;;  %v486_v0 = vpop.f32.mrf.mxu1 }
  0xd7   :  { %v415_v1 = vadd.f32 %v414_v63, %v341_v62  ;;  %v1993_v63 = vld [vmem:[%s2609_s6] ss:$0 sm:$0xff] }
  0xd8   :  { %v2103_v3 = vpop.f32.mrf.mxu0  ;;  %v2108_v4 = vpop.f32.mrf.mxu1 }
  0xd9   :  { %v487_v5 = vadd.f32 %v486_v0, %v415_v1 }
  0xda   :  { %v566_v6 = vpop.f32.mrf.mxu0  ;;  %v642_v7 = vpop.f32.mrf.mxu1 }
  0xdb   :  { %v567_v8 = vadd.f32 %v566_v6, %v487_v5 }
  0xdc   :  { %v2113_v9 = vpop.f32.mrf.mxu0  ;;  %v2118_v10 = vpop.f32.mrf.mxu1 }
  0xdd   :  { %v643_v11 = vadd.f32 %v642_v7, %v567_v8 }
  0xde   :  { %v716_v12 = vpop.f32.mrf.mxu0  ;;  %v790_v13 = vpop.f32.mrf.mxu1 }
  0xdf   :  { %v717_v14 = vadd.f32 %v716_v12, %v643_v11 }
  0xe0   :  { %v2123_v15 = vpop.f32.mrf.mxu0  ;;  %v2128_v16 = vpop.f32.mrf.mxu1 }
  0xe1   :  { %v791_v17 = vadd.f32 %v790_v13, %v717_v14 }
  0xe2   :  { %v864_v18 = vpop.f32.mrf.mxu0  ;;  %v936_v19 = vpop.f32.mrf.mxu1 }
  0xe3   :  { %v865_v20 = vadd.f32 %v864_v18, %v791_v17 }
  0xe4   :  { %v2133_v22 = vpop.f32.mrf.mxu0  ;;  %v2138_v23 = vpop.f32.mrf.mxu1 }
  0xe5   :  { %v937_v24 = vadd.f32 %v936_v19, %v865_v20 }
  0xe7   :  { %v947_v25 = vadd.f32 %v1992_v21, %v937_v24 }
  0xe9   :  { %v948_v26 = vmax.f32 %v947_v25, 0.0 }
  0xeb   :  { %v962_v27 = vsel %vm960_vm4, %v948_v26, 0  ;;  %v1994_v26 = vld [vmem:[%s2611_s8] ss:$0 sm:$0xff] }
  0xec   :  { %v1033_v28 = vand.u32 4294901760, %v962_v27 }
  0xee   :  { %v1034_v30 = vsub.f32 %v962_v27, %v1033_v28  ;;  %2159 = vmatmul.mubr.f32.vlgmr.msra.gmra.mxu1 %v1033_v28 }
  0xef   :  { %2173 = vmatpush3.msra.mxu1 %v2382_v29  ;;  %2180 = vmatprep.mubr.msk.f32.mxu1 %vm2274_vm1, %v2273_v2 }
  0xf0   :  { %2174 = vmatprep.subr.mxu1 %v2273_v2  ;;  %v1035_v33 = vand.u32 4294901760, %v1034_v30 }
  0xf1   :  { %2175 = vmatpush3.msra.mxu1 %v2390_v32 }
  0xf2   :  { %2176 = vmatprep.subr.mxu1 %v2273_v2  ;;  %v1036_v37 = vsub.f32 %v1034_v30, %v1035_v33 }
  0xf3   :  { %2177 = vmatpush3.msra.mxu1 %v2401_v36 }
  0xf4   :  { %2178 = vmatprep.subr.mxu1 %v2273_v2  ;;  %v1037_v38 = vand.u32 4294901760, %v1036_v37 }
  0xf5   :  { %2179 = vmatpush3.msra.mxu1 %v2415_v41 }
  0xf6   :  { %2181 = vmatmul.mubr.f32.vlgmr.msra.gmra.mxu1 %v1035_v33  ;;  %2194 = vmatprep.subr.mxu1 %v2273_v2 }
  0xf7   :  { %2148 = vmatmul.mubr.f32.vlgmr.msra.gmra.mxu0 %v1037_v38  ;;  %2195 = vmatpush3.msra.mxu1 %v2382_v29  ;;  %v1453_v29 = vld [vmem:[%s2610_s7 + $0x18] sm:$0xff] }
  0xf8   :  { %2162 = vmatpush3.msra.mxu0 %v2388_v31  ;;  %2196 = vmatprep.subr.mxu1 %v2273_v2  ;;  %v2494_v31 = vand.u32 4294901760, %v1453_v29 }
  0xf9   :  { %2163 = vmatprep.subr.mxu0 %v2273_v2  ;;  %2197 = vmatpush3.msra.mxu1 %v2390_v32  ;;  %v1452_v32 = vld [vmem:[%s2610_s7 + $0x10] sm:$0xff] }
  0xfa   :  { %2164 = vmatpush3.msra.mxu0 %v2399_v35  ;;  %2198 = vmatprep.subr.mxu1 %v2273_v2  ;;  %v2502_v35 = vand.u32 4294901760, %v1452_v32 }
  0xfb   :  { %2165 = vmatprep.subr.mxu0 %v2273_v2  ;;  %2199 = vmatpush3.msra.mxu1 %v2401_v36  ;;  %v1451_v36 = vld [vmem:[%s2610_s7 + $0x8] sm:$0xff] }
  0xfc   :  { %2166 = vmatpush3.msra.mxu0 %v2413_v40  ;;  %2200 = vmatprep.subr.mxu1 %v2273_v2  ;;  %v2511_v40 = vsub.f32 %v1452_v32, %v2502_v35 }
  0xfd   :  { %2167 = vmatprep.subr.mxu0 %v2273_v2  ;;  %2169 = vmatprep.mubr.msk.f32.mxu0 %vm2274_vm1, %v2273_v2 }
  0xfe   :  { %2168 = vmatpush3.msra.mxu0 %v2424_v45  ;;  %2201 = vmatpush3.msra.mxu1 %v2415_v41  ;;  %v2513_v41 = vand.u32 4294901760, %v1451_v36 }
  0xff   :  { %2202 = vmatprep.mubr.msk.f32.mxu1 %vm2274_vm1, %v2273_v2  ;;  %2170 = vmatmul.mubr.f32.vlgmr.msra.gmra.mxu0 %v1034_v30 }
 0x100   :  { %2183 = vmatprep.subr.mxu0 %v2273_v2  ;;  %2203 = vmatmul.mubr.f32.vlgmr.msra.gmra.mxu1 %v1033_v28  ;;  %v2525_v45 = vsub.f32 %v1451_v36, %v2513_v41 }
 0x101   :  { %2184 = vmatpush3.msra.mxu0 %v1070_v34  ;;  %2191 = vmatprep.mubr.msk.f32.mxu0 %vm2274_vm1, %v2273_v2  ;;  %v2500_v34 = vsub.f32 %v1453_v29, %v2494_v31 }
 0x102   :  { %2185 = vmatprep.subr.mxu0 %v2273_v2  ;;  %2216 = vmatprep.subr.mxu1 %v2273_v2  ;;  %v1584_v49 = vand.u32 4294901760, %v2525_v45 }
 0x103   :  { %2186 = vmatpush3.msra.mxu0 %v1077_v39  ;;  %2224 = vmatprep.mubr.msk.f32.mxu1 %vm2274_vm1, %v2273_v2  ;;  %v1570_v39 = vand.u32 4294901760, %v2500_v34 }
 0x104   :  { %2187 = vmatprep.subr.mxu0 %v2273_v2  ;;  %v1585_v52 = vsub.f32 %v2525_v45, %v1584_v49 }
 0x105   :  { %2188 = vmatpush3.msra.mxu0 %v1084_v44  ;;  %v1571_v43 = vsub.f32 %v2500_v34, %v1570_v39  ;;  %v1577_v44 = vand.u32 4294901760, %v2511_v40 }
 0x106   :  { %2189 = vmatprep.subr.mxu0 %v2273_v2  ;;  %v1586_v54 = vand.u32 4294901760, %v1585_v52 }
 0x107   :  { %2190 = vmatpush3.msra.mxu0 %v1091_v48  ;;  %v1572_v47 = vand.u32 4294901760, %v1571_v43  ;;  %v1578_v48 = vsub.f32 %v2511_v40, %v1577_v44 }
 0x108   :  { %2192 = vmatmul.mubr.f32.vlgmr.msra.gmra.mxu0 %v1033_v28  ;;  %2205 = vmatprep.subr.mxu0 %v2273_v2 }
 0x109   :  { %2213 = vmatprep.mubr.msk.f32.mxu0 %vm2274_vm1, %v2273_v2  ;;  %2206 = vmatpush3.msra.mxu0 %v2494_v31  ;;  %v1579_v51 = vand.u32 4294901760, %v1578_v48 }
 0x10a   :  { %2207 = vmatprep.subr.mxu0 %v2273_v2  ;;  %2217 = vmatpush3.msra.mxu1 %v1572_v47 }
 0x10b   :  { %2208 = vmatpush3.msra.mxu0 %v2502_v35  ;;  %2218 = vmatprep.subr.mxu1 %v2273_v2 }
 0x10c   :  { %2209 = vmatprep.subr.mxu0 %v2273_v2  ;;  %2219 = vmatpush3.msra.mxu1 %v1579_v51 }
 0x10d   :  { %2210 = vmatpush3.msra.mxu0 %v2513_v41  ;;  %2220 = vmatprep.subr.mxu1 %v2273_v2 }
 0x10e   :  { %2211 = vmatprep.subr.mxu0 %v2273_v2  ;;  %2221 = vmatpush3.msra.mxu1 %v1586_v54 }
 0x10f   :  { %2212 = vmatpush3.msra.mxu0 %v2527_v46  ;;  %2222 = vmatprep.subr.mxu1 %v2273_v2 }
 0x110   :  { %2227 = vmatprep.subr.mxu0 %v2273_v2  ;;  %2223 = vmatpush3.msra.mxu1 %v1593_v56 }
 0x111   :  { %2238 = vmatprep.subr.mxu1 %v2273_v2 }
 0x1ae   :  { %v1130_v57 = vpop.f32.mrf.mxu1 }
 0x1b0   :  { %v2160_v58 = vpop.f32.mrf.mxu1 }
 0x1b6   :  { %v1287_v59 = vpop.f32.mrf.mxu1 }
 0x1b7   :  { %v1039_v60 = vpop.f32.mrf.mxu0 }
 0x1b8   :  { %v2182_v61 = vpop.f32.mrf.mxu1  ;;  %v1040_v0 = vadd.f32 %v1993_v63, %v1039_v60 }
 0x1b9   :  { %v2149_v62 = vpop.f32.mrf.mxu0 }
 0x1ba   :  { %v1131_v4 = vadd.f32 %v1130_v57, %v1040_v0 }
 0x1bf   :  { %v1210_v1 = vpop.f32.mrf.mxu0 }
 0x1c0   :  { %v1445_v3 = vpop.f32.mrf.mxu1  ;;  %v1211_v7 = vadd.f32 %v1210_v1, %v1131_v4 }
 0x1c1   :  { %v2171_v5 = vpop.f32.mrf.mxu0 }
 0x1c2   :  { %v2204_v6 = vpop.f32.mrf.mxu1  ;;  %v1288_v8 = vadd.f32 %v1287_v59, %v1211_v7 }
 0x1c8   :  { %v1370_v9 = vpop.f32.mrf.mxu0 }
 0x1c9   :  { %v1371_v10 = vadd.f32 %v1370_v9, %v1288_v8 }
 0x1ca   :  { %v2193_v11 = vpop.f32.mrf.mxu0 }
 0x1cb   :  { %v1446_v12 = vadd.f32 %v1445_v3, %v1371_v10 }
 0x1cd   :  { %v1449_v13 = vmax.f32 %v1446_v12, 0.0 }
 0x1cf   :  { %v1462_v14 = vsel %vm960_vm4, %v1449_v13, 0 }
 0x1d0   :  { %v1533_v15 = vand.u32 4294901760, %v1462_v14 }
 0x1d2   :  { %v1534_v16 = vsub.f32 %v1462_v14, %v1533_v15  ;;  %2225 = vmatmul.mubr.f32.vlgmr.msra.gmra.mxu1 %v1533_v15 }
 0x1d3   :  { %2239 = vmatpush3.msra.mxu1 %v2494_v31  ;;  %2246 = vmatprep.mubr.msk.f32.mxu1 %vm2274_vm1, %v2273_v2 }
 0x1d4   :  { %2240 = vmatprep.subr.mxu1 %v2273_v2  ;;  %v1535_v17 = vand.u32 4294901760, %v1534_v16 }
 0x1d5   :  { %2241 = vmatpush3.msra.mxu1 %v2502_v35 }
 0x1d6   :  { %2242 = vmatprep.subr.mxu1 %v2273_v2  ;;  %v1536_v18 = vsub.f32 %v1534_v16, %v1535_v17 }
 0x1d7   :  { %2243 = vmatpush3.msra.mxu1 %v2513_v41 }
 0x1d8   :  { %2244 = vmatprep.subr.mxu1 %v2273_v2  ;;  %v1537_v19 = vand.u32 4294901760, %v1536_v18 }
 0x1d9   :  { %2245 = vmatpush3.msra.mxu1 %v2527_v46 }
 0x1da   :  { %2247 = vmatmul.mubr.f32.vlgmr.msra.gmra.mxu1 %v1535_v17  ;;  %2260 = vmatprep.subr.mxu1 %v2273_v2 }
 0x1db   :  { %2214 = vmatmul.mubr.f32.vlgmr.msra.gmra.mxu0 %v1537_v19  ;;  %2261 = vmatpush3.msra.mxu1 %v2494_v31 }
 0x1dc   :  { %2228 = vmatpush3.msra.mxu0 %v2500_v34  ;;  %2262 = vmatprep.subr.mxu1 %v2273_v2 }
 0x1dd   :  { %2229 = vmatprep.subr.mxu0 %v2273_v2  ;;  %2263 = vmatpush3.msra.mxu1 %v2502_v35 }
 0x1de   :  { %2230 = vmatpush3.msra.mxu0 %v2511_v40  ;;  %2264 = vmatprep.subr.mxu1 %v2273_v2 }
 0x1df   :  { %2231 = vmatprep.subr.mxu0 %v2273_v2  ;;  %2265 = vmatpush3.msra.mxu1 %v2513_v41 }
 0x1e0   :  { %2232 = vmatpush3.msra.mxu0 %v2525_v45  ;;  %2266 = vmatprep.subr.mxu1 %v2273_v2 }
 0x1e1   :  { %2233 = vmatprep.subr.mxu0 %v2273_v2  ;;  %2235 = vmatprep.mubr.msk.f32.mxu0 %vm2274_vm1, %v2273_v2 }
 0x1e2   :  { %2234 = vmatpush3.msra.mxu0 %v2536_v50  ;;  %2267 = vmatpush3.msra.mxu1 %v2527_v46 }
 0x1e3   :  { %2268 = vmatprep.mubr.msk.f32.mxu1 %vm2274_vm1, %v2273_v2  ;;  %2236 = vmatmul.mubr.f32.vlgmr.msra.gmra.mxu0 %v1534_v16 }
 0x1e4   :  { %2249 = vmatprep.subr.mxu0 %v2273_v2  ;;  %2269 = vmatmul.mubr.f32.vlgmr.msra.gmra.mxu1 %v1533_v15 }
 0x1e5   :  { %2250 = vmatpush3.msra.mxu0 %v1570_v39  ;;  %2257 = vmatprep.mubr.msk.f32.mxu0 %vm2274_vm1, %v2273_v2 }
 0x1e6   :  { %2251 = vmatprep.subr.mxu0 %v2273_v2 }
 0x1e7   :  { %2252 = vmatpush3.msra.mxu0 %v1577_v44 }
 0x1e8   :  { %2253 = vmatprep.subr.mxu0 %v2273_v2 }
 0x1e9   :  { %2254 = vmatpush3.msra.mxu0 %v1584_v49 }
 0x1ea   :  { %2255 = vmatprep.subr.mxu0 %v2273_v2 }
 0x1eb   :  { %2256 = vmatpush3.msra.mxu0 %v1591_v53 }
 0x1ec   :  { %2258 = vmatmul.mubr.f32.vlgmr.msra.gmra.mxu0 %v1533_v15 }
 0x292   :  { %v1630_v20 = vpop.f32.mrf.mxu1 }
 0x294   :  { %v2226_v21 = vpop.f32.mrf.mxu1 }
 0x29a   :  { %v1787_v22 = vpop.f32.mrf.mxu1 }
 0x29b   :  { %v1539_v23 = vpop.f32.mrf.mxu0 }
 0x29c   :  { %v2248_v24 = vpop.f32.mrf.mxu1  ;;  %v1540_v27 = vadd.f32 %v1994_v26, %v1539_v23 }
 0x29d   :  { %v2215_v25 = vpop.f32.mrf.mxu0 }
 0x29e   :  { %v1631_v33 = vadd.f32 %v1630_v20, %v1540_v27 }
 0x2a3   :  { %v1710_v28 = vpop.f32.mrf.mxu0 }
 0x2a4   :  { %v1945_v30 = vpop.f32.mrf.mxu1  ;;  %v1711_v38 = vadd.f32 %v1710_v28, %v1631_v33 }
 0x2a5   :  { %v2237_v37 = vpop.f32.mrf.mxu0 }
 0x2a6   :  { %v2270_v2 = vpop.f32.mrf.mxu1  ;;  %v1788_v29 = vadd.f32 %v1787_v22, %v1711_v38 }
 0x2ac   :  { %v1870_v31 = vpop.f32.mrf.mxu0 }
 0x2ad   :  { %v1871_v32 = vadd.f32 %v1870_v31, %v1788_v29 }
 0x2ae   :  { %v2259_v34 = vpop.f32.mrf.mxu0 }
 0x2af   :  { %v1946_v35 = vadd.f32 %v1945_v30, %v1871_v32 }
 0x2b1   :  { %1950 = vst.msk [vmem:[#allocation2] sm:$0xff] %vm1949_vm5, %v1946_v35 }
 0x2b8   :  { %v1969_v36 = vld [vmem:[#allocation2] sm:$0x3] }
 0x2b9   :  { %1970 = vst [vmem:[%s2612_s9] sm:$0x3] %v1969_v36 }

// kernel: _forward.1
= control target key start
LH: loop header
LB: loop body
LE: loop exit
PB: predicated region body
PF: predicated region fallthrough
CT: control target
= control target key end

     0   :  { %vm40_vm0 = vcmask 1043456   ;;  %v2273_v2 = vmov 0.0   ;;  %vm2274_vm1 = vmmov 0   ;;  %vm36_vm2 = vcmask 31744   ;;  %s2603_s0 = inlined_call_operand.vmem [shape: f32[2,8], index: 0, kind: input, shape index: {}]   ;;  %s2604_s1 = inlined_call_operand.vmem [shape: f32[2,4], index: 1, kind: input, shape index: {}]   ;;  %s2605_s2 = inlined_call_operand.vmem [shape: f32[8,32], index: 2, kind: input, shape index: {}]   ;;  %s2606_s3 = inlined_call_operand.vmem [shape: f32[4,32], index: 3, kind: input, shape index: {}]   ;;  %s2607_s4 = inlined_call_operand.vmem [shape: f32[1,32], index: 4, kind: input, shape index: {}]   ;;  %s2608_s5 = inlined_call_operand.vmem [shape: f32[32,32], index: 5, kind: input, shape index: {}]   ;;  %s2609_s6 = inlined_call_operand.vmem [shape: f32[1,32], index: 6, kind: input, shape index: {}]   ;;  %s2610_s7 = inlined_call_operand.vmem [shape: f32[32,9], index: 7, kind: input, shape index: {}]   ;;  %s2611_s8 = inlined_call_operand.vmem [shape: f32[1,9], index: 8, kind: input, shape index: {}]   ;;  %s2612_s9 = inlined_call_operand.vmem [shape: f32[2,9], index: 9, kind: output, shape index: {}]  }
   0x1   :  { %v35_v0 = vld [vmem:[%s2606_s3] sm:$0xf]  ;;  %2079 = vmatprep.subr.mxu0 %v2273_v2  ;;  %2081 = vmatprep.mubr.msk.f32.mxu0 %vm2274_vm1, %v2273_v2  ;;  %vm490_vm3 = vcmask 64512   ;;  %v952_v28 = vld [vmem:[%s2608_s5 + $0x18] sm:$0xff]  ;;  %v951_v30 = vld [vmem:[%s2608_s5 + $0x10] sm:$0xff]  ;;  %vm960_vm4 = vcmask 261120  }
   0x2   :  { %v33_v1 = vld [vmem:[%s2604_s1] sm:$0xff]  ;;  %v42_v3 = vsel %vm40_vm0, %v35_v0, 0  ;;  %2084 = vmatprep.subr.mxu1 %v2273_v2  ;;  %2086 = vmatprep.mubr.msk.f32.mxu1 %vm2274_vm1, %v2273_v2  ;;  %v2382_v29 = vand.u32 4294901760, %v952_v28  ;;  %v2390_v32 = vand.u32 4294901760, %v951_v30  ;;  %v950_v33 = vld [vmem:[%s2608_s5 + $0x8] sm:$0xff]  ;;  %vm1949_vm5 = vcmask 72704  }
   0x3   :  { %v34_v4 = vld [vmem:[%s2605_s2] sm:$0xff]  ;;  %v75_v6 = vand.u32 4294901760, %v42_v3  ;;  %v38_v7 = vsel %vm36_vm2, %v33_v1, 0  ;;  %v2401_v36 = vand.u32 4294901760, %v950_v33 }
   0x4   :  { %v32_v5 = vld [vmem:[%s2603_s0] sm:$0xff]  ;;  %v110_v9 = vand.u32 4294901760, %v38_v7  ;;  %v525_v10 = vand.u32 4294901760, %v34_v4  ;;  %v2388_v31 = vsub.f32 %v952_v28, %v2382_v29  ;;  %v2399_v35 = vsub.f32 %v951_v30, %v2390_v32 }
   0x5   :  { %v492_v8 = vsel %vm490_vm3, %v32_v5, 0  ;;  %2080 = vmatpush3.msra.mxu0 %v75_v6  ;;  %v152_v11 = vsub.f32 %v42_v3, %v75_v6  ;;  %v949_v37 = vld [vmem:[%s2608_s5] sm:$0xff]  ;;  %v2413_v40 = vsub.f32 %v950_v33, %v2401_v36 }
   0x6   :  { %2089 = vmatprep.subr.mxu0 %v2273_v2  ;;  %v111_v12 = vsub.f32 %v38_v7, %v110_v9  ;;  %v560_v13 = vand.u32 4294901760, %v492_v8  ;;  %v602_v16 = vsub.f32 %v34_v4, %v525_v10  ;;  %v1070_v34 = vand.u32 4294901760, %v2388_v31 }
   0x7   :  { %v153_v14 = vand.u32 4294901760, %v152_v11  ;;  %v1077_v39 = vand.u32 4294901760, %v2399_v35  ;;  %v2415_v41 = vand.u32 4294901760, %v949_v37  ;;  %v1084_v44 = vand.u32 4294901760, %v2413_v40 }
   0x8   :  { %v112_v15 = vand.u32 4294901760, %v111_v12  ;;  %v561_v19 = vsub.f32 %v492_v8, %v560_v13  ;;  %v603_v22 = vand.u32 4294901760, %v602_v16  ;;  %v1071_v38 = vsub.f32 %v2388_v31, %v1070_v34 }
   0x9   :  { %v154_v17 = vsub.f32 %v152_v11, %v153_v14  ;;  %v1078_v43 = vsub.f32 %v2399_v35, %v1077_v39  ;;  %v2424_v45 = vsub.f32 %v949_v37, %v2415_v41  ;;  %v1085_v47 = vsub.f32 %v2413_v40, %v1084_v44 }
   0xa   :  { %v113_v18 = vsub.f32 %v111_v12, %v112_v15  ;;  %v562_v23 = vand.u32 4294901760, %v561_v19  ;;  %v604_v24 = vsub.f32 %v602_v16, %v603_v22  ;;  %v1072_v42 = vand.u32 4294901760, %v1071_v38 }
   0xb   :  { %v155_v20 = vand.u32 4294901760, %v154_v17  ;;  %v1079_v46 = vand.u32 4294901760, %v1078_v43  ;;  %v1091_v48 = vand.u32 4294901760, %v2424_v45  ;;  %v1086_v49 = vand.u32 4294901760, %v1085_v47 }
   0xc   :  { %v114_v21 = vand.u32 4294901760, %v113_v18  ;;  %v563_v25 = vsub.f32 %v561_v19, %v562_v23  ;;  %v605_v26 = vand.u32 4294901760, %v604_v24 }
   0xd   :  { %2085 = vmatpush3.msra.mxu1 %v155_v20  ;;  %v1092_v50 = vsub.f32 %v2424_v45, %v1091_v48 }
   0xe   :  { %2082 = vmatmul.mubr.f32.vlgmr.msra.gmra.mxu0 %v114_v21  ;;  %2087 = vmatmul.mubr.f32.vlgmr.msra.gmra.mxu1 %v110_v9  ;;  %v564_v27 = vand.u32 4294901760, %v563_v25  ;;  %v1992_v21 = vld [vmem:[%s2607_s4] ss:$0 sm:$0xff] }
   0xf   :  { %2090 = vmatpush3.msra.mxu0 %v152_v11  ;;  %2094 = vmatprep.subr.mxu1 %v2273_v2  ;;  %v1093_v51 = vand.u32 4294901760, %v1092_v50 }
  0x10   :  { %2095 = vmatpush3.msra.mxu1 %v75_v6  ;;  %2091 = vmatprep.mubr.msk.f32.mxu0 %vm2274_vm1, %v2273_v2 }
  0x11   :  { %2099 = vmatprep.subr.mxu0 %v2273_v2  ;;  %2096 = vmatprep.mubr.msk.f32.mxu1 %vm2274_vm1, %v2273_v2 }
  0x12   :  { %2092 = vmatmul.mubr.f32.vlgmr.msra.gmra.mxu0 %v111_v12  ;;  %2097 = vmatmul.mubr.f32.vlgmr.msra.gmra.mxu1 %v112_v15 }
  0x13   :  { %2100 = vmatpush3.msra.mxu0 %v153_v14  ;;  %2104 = vmatprep.subr.mxu1 %v2273_v2 }
  0x14   :  { %2105 = vmatpush3.msra.mxu1 %v75_v6  ;;  %2101 = vmatprep.mubr.msk.f32.mxu0 %vm2274_vm1, %v2273_v2 }
  0x15   :  { %2109 = vmatprep.subr.mxu0 %v2273_v2  ;;  %2106 = vmatprep.mubr.msk.f32.mxu1 %vm2274_vm1, %v2273_v2 }
  0x16   :  { %2102 = vmatmul.mubr.f32.vlgmr.msra.gmra.mxu0 %v110_v9  ;;  %2107 = vmatmul.mubr.f32.vlgmr.msra.gmra.mxu1 %v110_v9 }
  0x17   :  { %2110 = vmatpush3.msra.mxu0 %v525_v10  ;;  %2114 = vmatprep.subr.mxu1 %v2273_v2 }
  0x18   :  { %2115 = vmatpush3.msra.mxu1 %v605_v26  ;;  %2111 = vmatprep.mubr.msk.f32.mxu0 %vm2274_vm1, %v2273_v2 }
  0x19   :  { %2119 = vmatprep.subr.mxu0 %v2273_v2  ;;  %2116 = vmatprep.mubr.msk.f32.mxu1 %vm2274_vm1, %v2273_v2 }
  0x1a   :  { %2112 = vmatmul.mubr.f32.vlgmr.msra.gmra.mxu0 %v564_v27  ;;  %2117 = vmatmul.mubr.f32.vlgmr.msra.gmra.mxu1 %v560_v13 }
  0x1b   :  { %2120 = vmatpush3.msra.mxu0 %v602_v16  ;;  %2124 = vmatprep.subr.mxu1 %v2273_v2 }
  0x1c   :  { %2125 = vmatpush3.msra.mxu1 %v525_v10  ;;  %2121 = vmatprep.mubr.msk.f32.mxu0 %vm2274_vm1, %v2273_v2 }
  0x1d   :  { %2129 = vmatprep.subr.mxu0 %v2273_v2  ;;  %2126 = vmatprep.mubr.msk.f32.mxu1 %vm2274_vm1, %v2273_v2 }
  0x1e   :  { %2122 = vmatmul.mubr.f32.vlgmr.msra.gmra.mxu0 %v561_v19  ;;  %2127 = vmatmul.mubr.f32.vlgmr.msra.gmra.mxu1 %v562_v23 }
  0x1f   :  { %2130 = vmatpush3.msra.mxu0 %v603_v22  ;;  %2134 = vmatprep.subr.mxu1 %v2273_v2 }
  0x20   :  { %2135 = vmatpush3.msra.mxu1 %v525_v10  ;;  %2131 = vmatprep.mubr.msk.f32.mxu0 %vm2274_vm1, %v2273_v2 }
  0x21   :  { %2136 = vmatprep.mubr.msk.f32.mxu1 %vm2274_vm1, %v2273_v2  ;;  %2150 = vmatprep.subr.mxu1 %v2273_v2 }
  0x22   :  { %2132 = vmatmul.mubr.f32.vlgmr.msra.gmra.mxu0 %v560_v13  ;;  %2137 = vmatmul.mubr.f32.vlgmr.msra.gmra.mxu1 %v560_v13 }
  0x23   :  { %2139 = vmatprep.subr.mxu0 %v2273_v2  ;;  %2158 = vmatprep.mubr.msk.f32.mxu1 %vm2274_vm1, %v2273_v2 }
  0x24   :  { %2147 = vmatprep.mubr.msk.f32.mxu0 %vm2274_vm1, %v2273_v2  ;;  %2140 = vmatpush3.msra.mxu0 %v2382_v29 }
  0x25   :  { %2141 = vmatprep.subr.mxu0 %v2273_v2  ;;  %2151 = vmatpush3.msra.mxu1 %v1072_v42  ;;  %v1450_v42 = vld [vmem:[%s2610_s7] sm:$0xff] }
  0x26   :  { %2142 = vmatpush3.msra.mxu0 %v2390_v32  ;;  %2152 = vmatprep.subr.mxu1 %v2273_v2 }
  0x27   :  { %2143 = vmatprep.subr.mxu0 %v2273_v2  ;;  %2153 = vmatpush3.msra.mxu1 %v1079_v46  ;;  %v2527_v46 = vand.u32 4294901760, %v1450_v42 }
  0x28   :  { %2144 = vmatpush3.msra.mxu0 %v2401_v36  ;;  %2154 = vmatprep.subr.mxu1 %v2273_v2 }
  0x29   :  { %2145 = vmatprep.subr.mxu0 %v2273_v2  ;;  %2155 = vmatpush3.msra.mxu1 %v1086_v49  ;;  %v2536_v50 = vsub.f32 %v1450_v42, %v2527_v46 }
  0x2a   :  { %2146 = vmatpush3.msra.mxu0 %v2415_v41  ;;  %2156 = vmatprep.subr.mxu1 %v2273_v2 }
  0x2b   :  { %2161 = vmatprep.subr.mxu0 %v2273_v2  ;;  %2157 = vmatpush3.msra.mxu1 %v1093_v51 }
  0x2c   :  { %2172 = vmatprep.subr.mxu1 %v2273_v2 }
  0xce   :  { %v116_v52 = vpop.f32.mrf.mxu0  ;;  %v192_v53 = vpop.f32.mrf.mxu1 }
  0xcf   :  { %v193_v54 = vadd.f32 %v192_v53, %v116_v52  ;;  %v1591_v53 = vand.u32 4294901760, %v2536_v50 }
  0xd0   :  { %v2083_v55 = vpop.f32.mrf.mxu0  ;;  %v2088_v56 = vpop.f32.mrf.mxu1 }
  0xd1   :  { %v1592_v55 = vsub.f32 %v2536_v50, %v1591_v53 }
  0xd2   :  { %v266_v57 = vpop.f32.mrf.mxu0  ;;  %v340_v58 = vpop.f32.mrf.mxu1 }
  0xd3   :  { %v267_v59 = vadd.f32 %v266_v57, %v193_v54  ;;  %v1593_v56 = vand.u32 4294901760, %v1592_v55 }
  0xd4   :  { %v2093_v60 = vpop.f32.mrf.mxu0  ;;  %v2098_v61 = vpop.f32.mrf.mxu1 }
  0xd5   :  { %v341_v62 = vadd.f32 %v340_v58, %v267_v59 }
  0xd6   :  { %v414_v63 = vpop.f32.mrf.mxu0  ;;  %v486_v0 = vpop.f32.mrf.mxu1 }
  0xd7   :  { %v415_v1 = vadd.f32 %v414_v63, %v341_v62  ;;  %v1993_v63 = vld [vmem:[%s2609_s6] ss:$0 sm:$0xff] }
  0xd8   :  { %v2103_v3 = vpop.f32.mrf.mxu0  ;;  %v2108_v4 = vpop.f32.mrf.mxu1 }
  0xd9   :  { %v487_v5 = vadd.f32 %v486_v0, %v415_v1 }
  0xda   :  { %v566_v6 = vpop.f32.mrf.mxu0  ;;  %v642_v7 = vpop.f32.mrf.mxu1 }
  0xdb   :  { %v567_v8 = vadd.f32 %v566_v6, %v487_v5 }
  0xdc   :  { %v2113_v9 = vpop.f32.mrf.mxu0  ;;  %v2118_v10 = vpop.f32.mrf.mxu1 }
  0xdd   :  { %v643_v11 = vadd.f32 %v642_v7, %v567_v8 }
  0xde   :  { %v716_v12 = vpop.f32.mrf.mxu0  ;;  %v790_v13 = vpop.f32.mrf.mxu1 }
  0xdf   :  { %v717_v14 = vadd.f32 %v716_v12, %v643_v11 }
  0xe0   :  { %v2123_v15 = vpop.f32.mrf.mxu0  ;;  %v2128_v16 = vpop.f32.mrf.mxu1 }
  0xe1   :  { %v791_v17 = vadd.f32 %v790_v13, %v717_v14 }
  0xe2   :  { %v864_v18 = vpop.f32.mrf.mxu0  ;;  %v936_v19 = vpop.f32.mrf.mxu1 }
  0xe3   :  { %v865_v20 = vadd.f32 %v864_v18, %v791_v17 }
  0xe4   :  { %v2133_v22 = vpop.f32.mrf.mxu0  ;;  %v2138_v23 = vpop.f32.mrf.mxu1 }
  0xe5   :  { %v937_v24 = vadd.f32 %v936_v19, %v865_v20 }
  0xe7   :  { %v947_v25 = vadd.f32 %v1992_v21, %v937_v24 }
  0xe9   :  { %v948_v26 = vmax.f32 %v947_v25, 0.0 }
  0xeb   :  { %v962_v27 = vsel %vm960_vm4, %v948_v26, 0  ;;  %v1994_v26 = vld [vmem:[%s2611_s8] ss:$0 sm:$0xff] }
  0xec   :  { %v1033_v28 = vand.u32 4294901760, %v962_v27 }
  0xee   :  { %v1034_v30 = vsub.f32 %v962_v27, %v1033_v28  ;;  %2159 = vmatmul.mubr.f32.vlgmr.msra.gmra.mxu1 %v1033_v28 }
  0xef   :  { %2173 = vmatpush3.msra.mxu1 %v2382_v29  ;;  %2180 = vmatprep.mubr.msk.f32.mxu1 %vm2274_vm1, %v2273_v2 }
  0xf0   :  { %2174 = vmatprep.subr.mxu1 %v2273_v2  ;;  %v1035_v33 = vand.u32 4294901760, %v1034_v30 }
  0xf1   :  { %2175 = vmatpush3.msra.mxu1 %v2390_v32 }
  0xf2   :  { %2176 = vmatprep.subr.mxu1 %v2273_v2  ;;  %v1036_v37 = vsub.f32 %v1034_v30, %v1035_v33 }
  0xf3   :  { %2177 = vmatpush3.msra.mxu1 %v2401_v36 }
  0xf4   :  { %2178 = vmatprep.subr.mxu1 %v2273_v2  ;;  %v1037_v38 = vand.u32 4294901760, %v1036_v37 }
  0xf5   :  { %2179 = vmatpush3.msra.mxu1 %v2415_v41 }
  0xf6   :  { %2181 = vmatmul.mubr.f32.vlgmr.msra.gmra.mxu1 %v1035_v33  ;;  %2194 = vmatprep.subr.mxu1 %v2273_v2 }
  0xf7   :  { %2148 = vmatmul.mubr.f32.vlgmr.msra.gmra.mxu0 %v1037_v38  ;;  %2195 = vmatpush3.msra.mxu1 %v2382_v29  ;;  %v1453_v29 = vld [vmem:[%s2610_s7 + $0x18] sm:$0xff] }
  0xf8   :  { %2162 = vmatpush3.msra.mxu0 %v2388_v31  ;;  %2196 = vmatprep.subr.mxu1 %v2273_v2  ;;  %v2494_v31 = vand.u32 4294901760, %v1453_v29 }
  0xf9   :  { %2163 = vmatprep.subr.mxu0 %v2273_v2  ;;  %2197 = vmatpush3.msra.mxu1 %v2390_v32  ;;  %v1452_v32 = vld [vmem:[%s2610_s7 + $0x10] sm:$0xff] }
  0xfa   :  { %2164 = vmatpush3.msra.mxu0 %v2399_v35  ;;  %2198 = vmatprep.subr.mxu1 %v2273_v2  ;;  %v2502_v35 = vand.u32 4294901760, %v1452_v32 }
  0xfb   :  { %2165 = vmatprep.subr.mxu0 %v2273_v2  ;;  %2199 = vmatpush3.msra.mxu1 %v2401_v36  ;;  %v1451_v36 = vld [vmem:[%s2610_s7 + $0x8] sm:$0xff] }
  0xfc   :  { %2166 = vmatpush3.msra.mxu0 %v2413_v40  ;;  %2200 = vmatprep.subr.mxu1 %v2273_v2  ;;  %v2511_v40 = vsub.f32 %v1452_v32, %v2502_v35 }
  0xfd   :  { %2167 = vmatprep.subr.mxu0 %v2273_v2  ;;  %2169 = vmatprep.mubr.msk.f32.mxu0 %vm2274_vm1, %v2273_v2 }
  0xfe   :  { %2168 = vmatpush3.msra.mxu0 %v2424_v45  ;;  %2201 = vmatpush3.msra.mxu1 %v2415_v41  ;;  %v2513_v41 = vand.u32 4294901760, %v1451_v36 }
  0xff   :  { %2202 = vmatprep.mubr.msk.f32.mxu1 %vm2274_vm1, %v2273_v2  ;;  %2170 = vmatmul.mubr.f32.vlgmr.msra.gmra.mxu0 %v1034_v30 }
 0x100   :  { %2183 = vmatprep.subr.mxu0 %v2273_v2  ;;  %2203 = vmatmul.mubr.f32.vlgmr.msra.gmra.mxu1 %v1033_v28  ;;  %v2525_v45 = vsub.f32 %v1451_v36, %v2513_v41 }
 0x101   :  { %2184 = vmatpush3.msra.mxu0 %v1070_v34  ;;  %2191 = vmatprep.mubr.msk.f32.mxu0 %vm2274_vm1, %v2273_v2  ;;  %v2500_v34 = vsub.f32 %v1453_v29, %v2494_v31 }
 0x102   :  { %2185 = vmatprep.subr.mxu0 %v2273_v2  ;;  %2216 = vmatprep.subr.mxu1 %v2273_v2  ;;  %v1584_v49 = vand.u32 4294901760, %v2525_v45 }
 0x103   :  { %2186 = vmatpush3.msra.mxu0 %v1077_v39  ;;  %2224 = vmatprep.mubr.msk.f32.mxu1 %vm2274_vm1, %v2273_v2  ;;  %v1570_v39 = vand.u32 4294901760, %v2500_v34 }
 0x104   :  { %2187 = vmatprep.subr.mxu0 %v2273_v2  ;;  %v1585_v52 = vsub.f32 %v2525_v45, %v1584_v49 }
 0x105   :  { %2188 = vmatpush3.msra.mxu0 %v1084_v44  ;;  %v1571_v43 = vsub.f32 %v2500_v34, %v1570_v39  ;;  %v1577_v44 = vand.u32 4294901760, %v2511_v40 }
 0x106   :  { %2189 = vmatprep.subr.mxu0 %v2273_v2  ;;  %v1586_v54 = vand.u32 4294901760, %v1585_v52 }
 0x107   :  { %2190 = vmatpush3.msra.mxu0 %v1091_v48  ;;  %v1572_v47 = vand.u32 4294901760, %v1571_v43  ;;  %v1578_v48 = vsub.f32 %v2511_v40, %v1577_v44 }
 0x108   :  { %2192 = vmatmul.mubr.f32.vlgmr.msra.gmra.mxu0 %v1033_v28  ;;  %2205 = vmatprep.subr.mxu0 %v2273_v2 }
 0x109   :  { %2213 = vmatprep.mubr.msk.f32.mxu0 %vm2274_vm1, %v2273_v2  ;;  %2206 = vmatpush3.msra.mxu0 %v2494_v31  ;;  %v1579_v51 = vand.u32 4294901760, %v1578_v48 }
 0x10a   :  { %2207 = vmatprep.subr.mxu0 %v2273_v2  ;;  %2217 = vmatpush3.msra.mxu1 %v1572_v47 }
 0x10b   :  { %2208 = vmatpush3.msra.mxu0 %v2502_v35  ;;  %2218 = vmatprep.subr.mxu1 %v2273_v2 }
 0x10c   :  { %2209 = vmatprep.subr.mxu0 %v2273_v2  ;;  %2219 = vmatpush3.msra.mxu1 %v1579_v51 }
 0x10d   :  { %2210 = vmatpush3.msra.mxu0 %v2513_v41  ;;  %2220 = vmatprep.subr.mxu1 %v2273_v2 }
 0x10e   :  { %2211 = vmatprep.subr.mxu0 %v2273_v2  ;;  %2221 = vmatpush3.msra.mxu1 %v1586_v54 }
 0x10f   :  { %2212 = vmatpush3.msra.mxu0 %v2527_v46  ;;  %2222 = vmatprep.subr.mxu1 %v2273_v2 }
 0x110   :  { %2227 = vmatprep.subr.mxu0 %v2273_v2  ;;  %2223 = vmatpush3.msra.mxu1 %v1593_v56 }
 0x111   :  { %2238 = vmatprep.subr.mxu1 %v2273_v2 }
 0x1ae   :  { %v1130_v57 = vpop.f32.mrf.mxu1 }
 0x1b0   :  { %v2160_v58 = vpop.f32.mrf.mxu1 }
 0x1b6   :  { %v1287_v59 = vpop.f32.mrf.mxu1 }
 0x1b7   :  { %v1039_v60 = vpop.f32.mrf.mxu0 }
 0x1b8   :  { %v2182_v61 = vpop.f32.mrf.mxu1  ;;  %v1040_v0 = vadd.f32 %v1993_v63, %v1039_v60 }
 0x1b9   :  { %v2149_v62 = vpop.f32.mrf.mxu0 }
 0x1ba   :  { %v1131_v4 = vadd.f32 %v1130_v57, %v1040_v0 }
 0x1bf   :  { %v1210_v1 = vpop.f32.mrf.mxu0 }
 0x1c0   :  { %v1445_v3 = vpop.f32.mrf.mxu1  ;;  %v1211_v7 = vadd.f32 %v1210_v1, %v1131_v4 }
 0x1c1   :  { %v2171_v5 = vpop.f32.mrf.mxu0 }
 0x1c2   :  { %v2204_v6 = vpop.f32.mrf.mxu1  ;;  %v1288_v8 = vadd.f32 %v1287_v59, %v1211_v7 }
 0x1c8   :  { %v1370_v9 = vpop.f32.mrf.mxu0 }
 0x1c9   :  { %v1371_v10 = vadd.f32 %v1370_v9, %v1288_v8 }
 0x1ca   :  { %v2193_v11 = vpop.f32.mrf.mxu0 }
 0x1cb   :  { %v1446_v12 = vadd.f32 %v1445_v3, %v1371_v10 }
 0x1cd   :  { %v1449_v13 = vmax.f32 %v1446_v12, 0.0 }
 0x1cf   :  { %v1462_v14 = vsel %vm960_vm4, %v1449_v13, 0 }
 0x1d0   :  { %v1533_v15 = vand.u32 4294901760, %v1462_v14 }
 0x1d2   :  { %v1534_v16 = vsub.f32 %v1462_v14, %v1533_v15  ;;  %2225 = vmatmul.mubr.f32.vlgmr.msra.gmra.mxu1 %v1533_v15 }
 0x1d3   :  { %2239 = vmatpush3.msra.mxu1 %v2494_v31  ;;  %2246 = vmatprep.mubr.msk.f32.mxu1 %vm2274_vm1, %v2273_v2 }
 0x1d4   :  { %2240 = vmatprep.subr.mxu1 %v2273_v2  ;;  %v1535_v17 = vand.u32 4294901760, %v1534_v16 }
 0x1d5   :  { %2241 = vmatpush3.msra.mxu1 %v2502_v35 }
 0x1d6   :  { %2242 = vmatprep.subr.mxu1 %v2273_v2  ;;  %v1536_v18 = vsub.f32 %v1534_v16, %v1535_v17 }
 0x1d7   :  { %2243 = vmatpush3.msra.mxu1 %v2513_v41 }
 0x1d8   :  { %2244 = vmatprep.subr.mxu1 %v2273_v2  ;;  %v1537_v19 = vand.u32 4294901760, %v1536_v18 }
 0x1d9   :  { %2245 = vmatpush3.msra.mxu1 %v2527_v46 }
 0x1da   :  { %2247 = vmatmul.mubr.f32.vlgmr.msra.gmra.mxu1 %v1535_v17  ;;  %2260 = vmatprep.subr.mxu1 %v2273_v2 }
 0x1db   :  { %2214 = vmatmul.mubr.f32.vlgmr.msra.gmra.mxu0 %v1537_v19  ;;  %2261 = vmatpush3.msra.mxu1 %v2494_v31 }
 0x1dc   :  { %2228 = vmatpush3.msra.mxu0 %v2500_v34  ;;  %2262 = vmatprep.subr.mxu1 %v2273_v2 }
 0x1dd   :  { %2229 = vmatprep.subr.mxu0 %v2273_v2  ;;  %2263 = vmatpush3.msra.mxu1 %v2502_v35 }
 0x1de   :  { %2230 = vmatpush3.msra.mxu0 %v2511_v40  ;;  %2264 = vmatprep.subr.mxu1 %v2273_v2 }
 0x1df   :  { %2231 = vmatprep.subr.mxu0 %v2273_v2  ;;  %2265 = vmatpush3.msra.mxu1 %v2513_v41 }
 0x1e0   :  { %2232 = vmatpush3.msra.mxu0 %v2525_v45  ;;  %2266 = vmatprep.subr.mxu1 %v2273_v2 }
 0x1e1   :  { %2233 = vmatprep.subr.mxu0 %v2273_v2  ;;  %2235 = vmatprep.mubr.msk.f32.mxu0 %vm2274_vm1, %v2273_v2 }
 0x1e2   :  { %2234 = vmatpush3.msra.mxu0 %v2536_v50  ;;  %2267 = vmatpush3.msra.mxu1 %v2527_v46 }
 0x1e3   :  { %2268 = vmatprep.mubr.msk.f32.mxu1 %vm2274_vm1, %v2273_v2  ;;  %2236 = vmatmul.mubr.f32.vlgmr.msra.gmra.mxu0 %v1534_v16 }
 0x1e4   :  { %2249 = vmatprep.subr.mxu0 %v2273_v2  ;;  %2269 = vmatmul.mubr.f32.vlgmr.msra.gmra.mxu1 %v1533_v15 }
 0x1e5   :  { %2250 = vmatpush3.msra.mxu0 %v1570_v39  ;;  %2257 = vmatprep.mubr.msk.f32.mxu0 %vm2274_vm1, %v2273_v2 }
 0x1e6   :  { %2251 = vmatprep.subr.mxu0 %v2273_v2 }
 0x1e7   :  { %2252 = vmatpush3.msra.mxu0 %v1577_v44 }
 0x1e8   :  { %2253 = vmatprep.subr.mxu0 %v2273_v2 }
 0x1e9   :  { %2254 = vmatpush3.msra.mxu0 %v1584_v49 }
 0x1ea   :  { %2255 = vmatprep.subr.mxu0 %v2273_v2 }
 0x1eb   :  { %2256 = vmatpush3.msra.mxu0 %v1591_v53 }
 0x1ec   :  { %2258 = vmatmul.mubr.f32.vlgmr.msra.gmra.mxu0 %v1533_v15 }
 0x292   :  { %v1630_v20 = vpop.f32.mrf.mxu1 }
 0x294   :  { %v2226_v21 = vpop.f32.mrf.mxu1 }
 0x29a   :  { %v1787_v22 = vpop.f32.mrf.mxu1 }
 0x29b   :  { %v1539_v23 = vpop.f32.mrf.mxu0 }
 0x29c   :  { %v2248_v24 = vpop.f32.mrf.mxu1  ;;  %v1540_v27 = vadd.f32 %v1994_v26, %v1539_v23 }
 0x29d   :  { %v2215_v25 = vpop.f32.mrf.mxu0 }
 0x29e   :  { %v1631_v33 = vadd.f32 %v1630_v20, %v1540_v27 }
 0x2a3   :  { %v1710_v28 = vpop.f32.mrf.mxu0 }
 0x2a4   :  { %v1945_v30 = vpop.f32.mrf.mxu1  ;;  %v1711_v38 = vadd.f32 %v1710_v28, %v1631_v33 }
 0x2a5   :  { %v2237_v37 = vpop.f32.mrf.mxu0 }
 0x2a6   :  { %v2270_v2 = vpop.f32.mrf.mxu1  ;;  %v1788_v29 = vadd.f32 %v1787_v22, %v1711_v38 }
 0x2ac   :  { %v1870_v31 = vpop.f32.mrf.mxu0 }
 0x2ad   :  { %v1871_v32 = vadd.f32 %v1870_v31, %v1788_v29 }
 0x2ae   :  { %v2259_v34 = vpop.f32.mrf.mxu0 }
 0x2af   :  { %v1946_v35 = vadd.f32 %v1945_v30, %v1871_v32 }
 0x2b1   :  { %1950 = vst.msk [vmem:[#allocation2] sm:$0xff] %vm1949_vm5, %v1946_v35 }
 0x2b8   :  { %v1969_v36 = vld [vmem:[#allocation2] sm:$0x3] }
 0x2b9   :  { %1970 = vst [vmem:[%s2612_s9] sm:$0x3] %v1969_v36 }

</bundles_post_ra>
